<compile_context>
chip_gen: v6e
topology: v6e:2x2x1
jax: 0.10.0
libtpu: 0.0.40
codegen_flags: <defaults>
</compile_context>

<pallas_src>
import math

import jax
import jax.numpy as jnp
from jax.experimental import pallas as pl
from jax.experimental.pallas import tpu as pltpu

LN_EPS = 1e-5


def _layer_norm(x, gamma, beta):
    mu = jnp.mean(x, axis=-1, keepdims=True)
    var = jnp.mean((x - mu) ** 2, axis=-1, keepdims=True)
    return (x - mu) * jax.lax.rsqrt(var + LN_EPS) * gamma + beta


def decoder2d_kernel(x_ref, k_ref, v_ref, m_ref, dpm_ref,
                     wq_ref, bq_ref, wa_ref, ba_ref, g_ref, beta_ref,
                     w1_ref, b1_ref, w2_ref, b2_ref,
                     out_ref, score_ref, attn_acc, score_acc):
    head = pl.program_id(1)
    last_head = pl.num_programs(1) - 1
    T = k_ref.shape[0]

    @pl.when(head == 0)
    def _():
        attn_acc[...] = jnp.zeros_like(attn_acc)
        score_acc[...] = jnp.zeros_like(score_acc)

    x = x_ref[...]                                   # (S, E) f32 (residual path)
    x_bf = x.astype(jnp.bfloat16)

    # --- per-head query projection (1/sqrt(Dh) already folded into Wq / bq)
    q = jnp.dot(x_bf, wq_ref[...],
                preferred_element_type=jnp.float32) + bq_ref[...]       # (S, Dh)

    # --- attention scores for this head: contract Dh against K (T, Dh) -> (S, T)
    s = jax.lax.dot_general(q.astype(jnp.bfloat16), k_ref[...],
                            (((1,), (1,)), ((), ())),
                            preferred_element_type=jnp.float32)
    s = s - (1.0 - m_ref[...]) * 100000.0            # (1, T) bias, broadcast over S

    # --- softmax over T (f32), then query-dim mask (as in the PyTorch module)
    s = s - jnp.max(s, axis=-1, keepdims=True)
    p = jnp.exp(s)
    p = p * pl.reciprocal(jnp.sum(p, axis=-1, keepdims=True), approx=True)
    p = p * dpm_ref[...]                             # (S, 1) mask, broadcast over T

    # --- target-score contribution of this head: max over queries S
    score_acc[...] += jnp.max(p, axis=0, keepdims=True)                 # (1, T)

    # --- per-head context and its slice of the attention Linear:
    #     ctx @ Wa == sum_h ctx_h @ Wa[h*Dh:(h+1)*Dh, :]   (head-sum is the grid reduction)
    ctx = jnp.dot(p.astype(jnp.bfloat16), v_ref[...],
                  preferred_element_type=jnp.float32)                   # (S, Dh)
    attn_acc[...] += jnp.dot(ctx.astype(jnp.bfloat16), wa_ref[...],
                             preferred_element_type=jnp.float32)        # (S, E)

    # --- finalize this batch row-block after the last head
    @pl.when(head == last_head)
    def _():
        attn = attn_acc[...] + ba_ref[...]
        a = _layer_norm(attn + x, g_ref[...], beta_ref[...])
        h1 = jnp.maximum(
            jnp.dot(a.astype(jnp.bfloat16), w1_ref[...],
                    preferred_element_type=jnp.float32) + b1_ref[...], 0.0)
        h2 = jnp.dot(h1.astype(jnp.bfloat16), w2_ref[...],
                     preferred_element_type=jnp.float32) + b2_ref[...]
        out_ref[...] = _layer_norm(h2 + a, g_ref[...], beta_ref[...])
        # lane-dense padded score block; wrapper slices back to (B, T)
        score_ref[...] = jnp.zeros_like(score_ref)
        score_ref[:, :T] = score_acc[...]


@jax.jit
def decoder2d_pallas(dp_emb, dp_mask, K, V, M, params):
    B, S, E = dp_emb.shape
    _, H, T, Dh = K.shape
    hidden = params["w1"].shape[0]
    t_pad = ((T + 127) // 128) * 128
    scale = 1.0 / math.sqrt(Dh)

    # --- one-time weight transforms (wrapper-side) -------------------------
    # head-blocked query weights / bias with 1/sqrt(Dh) folded in
    wq_h = (params["wq"].T * scale).reshape(E, H, Dh).transpose(1, 0, 2)
    wq_h = wq_h.astype(jnp.bfloat16)                       # (H, E, Dh)
    bq_h = (params["bq"] * scale).reshape(H, 1, Dh).astype(jnp.float32)
    # head-blocked rows of the attention Linear
    wa_h = params["wa"].T.reshape(H, Dh, E).astype(jnp.bfloat16)   # (H, Dh, E)
    ba = params["ba"].reshape(1, E).astype(jnp.float32)
    # FFN weights (pre-transposed to (in, out)), biases, LayerNorm params
    w1_t = params["w1"].T.astype(jnp.bfloat16)             # (E, hidden)
    b1 = params["b1"].reshape(1, hidden).astype(jnp.float32)
    w2_t = params["w2"].T.astype(jnp.bfloat16)             # (hidden, E)
    b2 = params["b2"].reshape(1, E).astype(jnp.float32)
    g = params["g"].reshape(1, E).astype(jnp.float32)
    beta = params["b"].reshape(1, E).astype(jnp.float32)

    # activations / attention inputs
    x2d = dp_emb.reshape(B * S, E).astype(jnp.float32)     # B folded into rows
    k_bf = K.astype(jnp.bfloat16)                          # (B, H, T, Dh)
    v_bf = V.astype(jnp.bfloat16)                          # (B, H, T, Dh)
    m3 = M.reshape(B, 1, T).astype(jnp.float32)            # compact mask, no broadcast
    dpm3 = dp_mask.reshape(B, S, 1).astype(jnp.float32)

    out2d, score_pad = pl.pallas_call(
        decoder2d_kernel,
        out_shape=(jax.ShapeDtypeStruct((B * S, E), jnp.float32),
                   jax.ShapeDtypeStruct((B, 1, t_pad), jnp.float32)),
        grid_spec=pltpu.PrefetchScalarGridSpec(
            num_scalar_prefetch=0,
            grid=(B, H),                                   # b parallel, head reduction
            in_specs=[
                pl.BlockSpec((S, E), lambda b, h: (b, 0)),                     # x rows of batch b
                pl.BlockSpec((None, None, T, Dh), lambda b, h: (b, h, 0, 0)),  # K[b, h]
                pl.BlockSpec((None, None, T, Dh), lambda b, h: (b, h, 0, 0)),  # V[b, h]
                pl.BlockSpec((None, 1, T), lambda b, h: (b, 0, 0)),            # M[b]
                pl.BlockSpec((None, S, 1), lambda b, h: (b, 0, 0)),            # dp_mask[b]
                pl.BlockSpec((None, E, Dh), lambda b, h: (h, 0, 0)),           # Wq head block
                pl.BlockSpec((None, 1, Dh), lambda b, h: (h, 0, 0)),           # bq head block
                pl.BlockSpec((None, Dh, E), lambda b, h: (h, 0, 0)),           # Wa head rows
                pl.BlockSpec((1, E), lambda b, h: (0, 0)),                     # ba
                pl.BlockSpec((1, E), lambda b, h: (0, 0)),                     # LN gamma
                pl.BlockSpec((1, E), lambda b, h: (0, 0)),                     # LN beta
                pl.BlockSpec((E, hidden), lambda b, h: (0, 0)),                # W1
                pl.BlockSpec((1, hidden), lambda b, h: (0, 0)),                # b1
                pl.BlockSpec((hidden, E), lambda b, h: (0, 0)),                # W2
                pl.BlockSpec((1, E), lambda b, h: (0, 0)),                     # b2
            ],
            out_specs=(
                pl.BlockSpec((S, E), lambda b, h: (b, 0)),                     # layer output
                pl.BlockSpec((None, 1, t_pad), lambda b, h: (b, 0, 0)),        # padded score
            ),
            scratch_shapes=[
                pltpu.VMEM((S, E), jnp.float32),          # attention-Linear accumulator
                pltpu.VMEM((1, T), jnp.float32),          # target-score accumulator
            ],
        ),
        compiler_params=pltpu.CompilerParams(
            dimension_semantics=("parallel", "arbitrary"),
            vmem_limit_bytes=32 * 1024 * 1024),
    )(x2d, k_bf, v_bf, m3, dpm3, wq_h, bq_h, wa_h, ba, g, beta, w1_t, b1, w2_t, b2)

    return out2d.reshape(B, S, E), score_pad[:, 0, :T]


# ----------------- pure-JAX reference (for validation) -----------------
def decoder2d_ref(dp_emb, dp_mask, K, V, M, params):
    B, S, E = dp_emb.shape
    H, T, Dh = K.shape[1], K.shape[2], K.shape[3]

    q = dp_emb @ params["wq"].T + params["bq"]
    q = q.reshape(B, S, H, Dh).transpose(0, 2, 1, 3)              # (B,H,S,Dh)
    scores = jnp.einsum("bhsd,bhtd->bhst", q, K) / math.sqrt(Dh)
    big_m = (1.0 - M)[:, None, None, :] * 100000.0
    scores = scores - big_m
    probs = jax.nn.softmax(scores, axis=-1)
    probs = probs * dp_mask[:, None, :, None]
    target_score = jnp.sum(jnp.max(probs, axis=2), axis=1)        # (B,T)
    ctx = jnp.einsum("bhst,bhtd->bhsd", probs, V)
    ctx = ctx.transpose(0, 2, 1, 3).reshape(B, S, E)

    attn = ctx @ params["wa"].T + params["ba"]
    a = _layer_norm(attn + dp_emb, params["g"], params["b"])
    h1 = jax.nn.relu(a @ params["w1"].T + params["b1"])
    h2 = h1 @ params["w2"].T + params["b2"]
    out = _layer_norm(h2 + a, params["g"], params["b"])
    return out, target_score


if __name__ == "__main__":
    B, S, T = 2, 8, 16
    E, H, HIDDEN = 32, 4, 64
    Dh = E // H

    key = jax.random.PRNGKey(0)
    keys = jax.random.split(key, 16)

    dp_emb = jax.random.normal(keys[0], (B, S, E), jnp.float32)
    dp_mask = (jax.random.uniform(keys[1], (B, S)) > 0.2).astype(jnp.float32)
    K = jax.random.normal(keys[2], (B, H, T, Dh), jnp.float32)
    V = jax.random.normal(keys[3], (B, H, T, Dh), jnp.float32)
    M = (jax.random.uniform(keys[4], (B, T)) > 0.25).astype(jnp.float32)

    def init_linear(kw, kb, out_dim, in_dim):
        bound = 1.0 / math.sqrt(in_dim)
        w = jax.random.uniform(kw, (out_dim, in_dim), jnp.float32, -bound, bound)
        b = jax.random.uniform(kb, (out_dim,), jnp.float32, -bound, bound)
        return w, b

    wq, bq = init_linear(keys[5], keys[6], E, E)         # SearchAttention.query
    wa, ba = init_linear(keys[7], keys[8], E, E)         # attentonLayer
    w1, b1 = init_linear(keys[9], keys[10], HIDDEN, E)   # hiddenLayer1
    w2, b2 = init_linear(keys[11], keys[12], E, HIDDEN)  # hiddenLayer2
    params = dict(
        wq=wq, bq=bq, wa=wa, ba=ba, w1=w1, b1=b1, w2=w2, b2=b2,
        g=jnp.ones((E,), jnp.float32), b=jnp.zeros((E,), jnp.float32))

    out, score = decoder2d_pallas(dp_emb, dp_mask, K, V, M, params)
    jax.block_until_ready((out, score))

    ref_out, ref_score = decoder2d_ref(dp_emb, dp_mask, K, V, M, params)
    assert out.shape == (B, S, E) and score.shape == (B, T)
    assert jnp.allclose(out, ref_out, atol=2e-2, rtol=2e-2)
    assert jnp.allclose(score, ref_score, atol=2e-2, rtol=2e-2)

    print("KERNEL_OK")
</pallas_src>

<mosaic_0001>
module attributes {stable_mosaic.version = 11 : i64} {
  func.func @decoder2d_kernel(%arg0: i32, %arg1: i32, %arg2: memref<8x32xf32, #tpu.memory_space<vmem>>, %arg3: memref<1x1x16x8xbf16, #tpu.memory_space<vmem>>, %arg4: memref<1x1x16x8xbf16, #tpu.memory_space<vmem>>, %arg5: memref<1x1x16xf32, #tpu.memory_space<vmem>>, %arg6: memref<1x8x1xf32, #tpu.memory_space<vmem>>, %arg7: memref<1x32x8xbf16, #tpu.memory_space<vmem>>, %arg8: memref<1x1x8xf32, #tpu.memory_space<vmem>>, %arg9: memref<1x8x32xbf16, #tpu.memory_space<vmem>>, %arg10: memref<1x32xf32, #tpu.memory_space<vmem>>, %arg11: memref<1x32xf32, #tpu.memory_space<vmem>>, %arg12: memref<1x32xf32, #tpu.memory_space<vmem>>, %arg13: memref<32x64xbf16, #tpu.memory_space<vmem>>, %arg14: memref<1x64xf32, #tpu.memory_space<vmem>>, %arg15: memref<64x32xbf16, #tpu.memory_space<vmem>>, %arg16: memref<1x32xf32, #tpu.memory_space<vmem>>, %arg17: memref<8x32xf32, #tpu.memory_space<vmem>>, %arg18: memref<1x1x128xf32, #tpu.memory_space<vmem>>, %arg19: memref<8x32xf32, #tpu.memory_space<vmem>>, %arg20: memref<1x16xf32, #tpu.memory_space<vmem>>) attributes {dimension_semantics = [#tpu.dimension_semantics<parallel>, #tpu.dimension_semantics<arbitrary>], iteration_bounds = array<i64: 2, 4>, scalar_prefetch = 0 : i64, scratch_operands = 2 : i64, tpu.core_type = #tpu.core_type<tc>, window_params = [{transform_indices = @transform_0, window_bounds = array<i64: 8, 32>}, {transform_indices = @transform_1, window_bounds = array<i64: 1, 1, 16, 8>}, {transform_indices = @transform_2, window_bounds = array<i64: 1, 1, 16, 8>}, {transform_indices = @transform_3, window_bounds = array<i64: 1, 1, 16>}, {transform_indices = @transform_4, window_bounds = array<i64: 1, 8, 1>}, {transform_indices = @transform_5, window_bounds = array<i64: 1, 32, 8>}, {transform_indices = @transform_6, window_bounds = array<i64: 1, 1, 8>}, {transform_indices = @transform_7, window_bounds = array<i64: 1, 8, 32>}, {pipeline_mode = #tpu.pipeline_mode<synchronous>, transform_indices = @transform_8, window_bounds = array<i64: 1, 32>}, {pipeline_mode = #tpu.pipeline_mode<synchronous>, transform_indices = @transform_9, window_bounds = array<i64: 1, 32>}, {pipeline_mode = #tpu.pipeline_mode<synchronous>, transform_indices = @transform_10, window_bounds = array<i64: 1, 32>}, {pipeline_mode = #tpu.pipeline_mode<synchronous>, transform_indices = @transform_11, window_bounds = array<i64: 32, 64>}, {pipeline_mode = #tpu.pipeline_mode<synchronous>, transform_indices = @transform_12, window_bounds = array<i64: 1, 64>}, {pipeline_mode = #tpu.pipeline_mode<synchronous>, transform_indices = @transform_13, window_bounds = array<i64: 64, 32>}, {pipeline_mode = #tpu.pipeline_mode<synchronous>, transform_indices = @transform_14, window_bounds = array<i64: 1, 32>}, {transform_indices = @transform_15, window_bounds = array<i64: 8, 32>}, {transform_indices = @transform_16, window_bounds = array<i64: 1, 1, 128>}]} {
    %c0_i32 = arith.constant 0 : i32
    %0 = arith.cmpi eq, %arg1, %c0_i32 : i32
    %1 = arith.extui %0 : i1 to i32
    %c0_i32_0 = arith.constant 0 : i32
    %2 = arith.cmpi ne, %1, %c0_i32_0 : i32
    scf.if %2 {
      %cst_42 = arith.constant 0.000000e+00 : f32
      %57 = vector.broadcast %cst_42 : f32 to vector<8x32xf32>
      %c0_43 = arith.constant 0 : index
      %c0_44 = arith.constant 0 : index
      %58 = vector.load %arg19[%c0_43, %c0_44] : memref<8x32xf32, #tpu.memory_space<vmem>>, vector<8x32xf32>
      tpu.vector_store %arg19[%c0_43, %c0_44], %57 {strides = array<i32>} : memref<8x32xf32, #tpu.memory_space<vmem>>, vector<8x32xf32>,
      %cst_45 = arith.constant 0.000000e+00 : f32
      %59 = vector.broadcast %cst_45 : f32 to vector<1x16xf32>
      %c0_46 = arith.constant 0 : index
      %c0_47 = arith.constant 0 : index
      %60 = vector.load %arg20[%c0_46, %c0_47] : memref<1x16xf32, #tpu.memory_space<vmem>>, vector<1x16xf32>
      tpu.vector_store %arg20[%c0_46, %c0_47], %59 {strides = array<i32>} : memref<1x16xf32, #tpu.memory_space<vmem>>, vector<1x16xf32>,
    } else {
    }
    %c0 = arith.constant 0 : index
    %c0_1 = arith.constant 0 : index
    %3 = vector.load %arg2[%c0, %c0_1] : memref<8x32xf32, #tpu.memory_space<vmem>>, vector<8x32xf32>
    %4 = arith.truncf %3 : vector<8x32xf32> to vector<8x32xbf16>
    %c0_2 = arith.constant 0 : index
    %c0_3 = arith.constant 0 : index
    %c0_4 = arith.constant 0 : index
    %5 = vector.load %arg7[%c0_2, %c0_3, %c0_4] : memref<1x32x8xbf16, #tpu.memory_space<vmem>>, vector<1x32x8xbf16>
    %6 = vector.shape_cast %5 : vector<1x32x8xbf16> to vector<32x8xbf16>
    %cst = arith.constant dense<0.000000e+00> : vector<8x8xf32>
    %7 = tpu.matmul %4, %6, %cst {dimension_numbers = #tpu.dot_dimension_numbers<[1], [0], [0], [1], [0, 0, 1, 1], [], []>} : vector<8x32xbf16>, vector<32x8xbf16>, vector<8x8xf32> -> vector<8x8xf32>
    %c0_5 = arith.constant 0 : index
    %c0_6 = arith.constant 0 : index
    %c0_7 = arith.constant 0 : index
    %8 = vector.load %arg8[%c0_5, %c0_6, %c0_7] : memref<1x1x8xf32, #tpu.memory_space<vmem>>, vector<1x1x8xf32>
    %9 = vector.shape_cast %8 : vector<1x1x8xf32> to vector<1x8xf32>
    %10 = vector.broadcast %9 : vector<1x8xf32> to vector<8x8xf32>
    %11 = arith.addf %7, %10 : vector<8x8xf32>
    %12 = arith.truncf %11 : vector<8x8xf32> to vector<8x8xbf16>
    %c0_8 = arith.constant 0 : index
    %c0_9 = arith.constant 0 : index
    %c0_10 = arith.constant 0 : index
    %c0_11 = arith.constant 0 : index
    %13 = vector.load %arg3[%c0_8, %c0_9, %c0_10, %c0_11] : memref<1x1x16x8xbf16, #tpu.memory_space<vmem>>, vector<1x1x16x8xbf16>
    %14 = vector.shape_cast %13 : vector<1x1x16x8xbf16> to vector<16x8xbf16>
    %cst_12 = arith.constant dense<0.000000e+00> : vector<8x16xf32>
    %15 = tpu.matmul %12, %14, %cst_12 {dimension_numbers = #tpu.dot_dimension_numbers<[1], [1], [0], [0], [0, 0, 1, 0], [], []>} : vector<8x8xbf16>, vector<16x8xbf16>, vector<8x16xf32> -> vector<8x16xf32>
    %c0_13 = arith.constant 0 : index
    %c0_14 = arith.constant 0 : index
    %c0_15 = arith.constant 0 : index
    %16 = vector.load %arg5[%c0_13, %c0_14, %c0_15] : memref<1x1x16xf32, #tpu.memory_space<vmem>>, vector<1x1x16xf32>
    %17 = vector.shape_cast %16 : vector<1x1x16xf32> to vector<1x16xf32>
    %cst_16 = arith.constant 1.000000e+00 : f32
    %18 = vector.broadcast %cst_16 : f32 to vector<1x16xf32>
    %19 = arith.subf %18, %17 : vector<1x16xf32>
    %cst_17 = arith.constant 1.000000e+05 : f32
    %20 = vector.broadcast %cst_17 : f32 to vector<1x16xf32>
    %21 = arith.mulf %19, %20 : vector<1x16xf32>
    %22 = vector.broadcast %21 : vector<1x16xf32> to vector<8x16xf32>
    %23 = arith.subf %15, %22 : vector<8x16xf32>
    %cst_18 = arith.constant dense<0xFF800000> : vector<8xf32>
    %24 = vector.multi_reduction <maximumf>, %23, %cst_18 [1] : vector<8x16xf32> to vector<8xf32>
    %25 = vector.shape_cast %24 : vector<8xf32> to vector<8x1xf32>
    %26 = vector.broadcast %25 : vector<8x1xf32> to vector<8x16xf32>
    %27 = arith.subf %23, %26 : vector<8x16xf32>
    %28 = math.exp %27 : vector<8x16xf32>
    %cst_19 = arith.constant dense<0.000000e+00> : vector<8xf32>
    %29 = vector.multi_reduction <add>, %28, %cst_19 [1] : vector<8x16xf32> to vector<8xf32>
    %30 = vector.shape_cast %29 : vector<8xf32> to vector<8x1xf32>
    %31 = tpu.reciprocal %30 {approx = true} : vector<8x1xf32> -> vector<8x1xf32>
    %32 = vector.broadcast %31 : vector<8x1xf32> to vector<8x16xf32>
    %33 = arith.mulf %28, %32 : vector<8x16xf32>
    %c0_20 = arith.constant 0 : index
    %c0_21 = arith.constant 0 : index
    %c0_22 = arith.constant 0 : index
    %34 = vector.load %arg6[%c0_20, %c0_21, %c0_22] : memref<1x8x1xf32, #tpu.memory_space<vmem>>, vector<1x8x1xf32>
    %35 = vector.shape_cast %34 : vector<1x8x1xf32> to vector<8x1xf32>
    %36 = vector.broadcast %35 : vector<8x1xf32> to vector<8x16xf32>
    %37 = arith.mulf %33, %36 : vector<8x16xf32>
    %c0_23 = arith.constant 0 : index
    %c0_24 = arith.constant 0 : index
    %38 = vector.load %arg20[%c0_23, %c0_24] : memref<1x16xf32, #tpu.memory_space<vmem>>, vector<1x16xf32>
    %cst_25 = arith.constant dense<0xFF800000> : vector<16xf32>
    %39 = vector.multi_reduction <maximumf>, %37, %cst_25 [0] : vector<8x16xf32> to vector<16xf32>
    %40 = vector.shape_cast %39 : vector<16xf32> to vector<1x16xf32>
    %41 = arith.addf %38, %40 : vector<1x16xf32>
    %c0_26 = arith.constant 0 : index
    %c0_27 = arith.constant 0 : index
    %42 = vector.load %arg20[%c0_26, %c0_27] : memref<1x16xf32, #tpu.memory_space<vmem>>, vector<1x16xf32>
    tpu.vector_store %arg20[%c0_26, %c0_27], %41 {strides = array<i32>} : memref<1x16xf32, #tpu.memory_space<vmem>>, vector<1x16xf32>,
    %43 = arith.truncf %37 : vector<8x16xf32> to vector<8x16xbf16>
    %c0_28 = arith.constant 0 : index
    %c0_29 = arith.constant 0 : index
    %c0_30 = arith.constant 0 : index
    %c0_31 = arith.constant 0 : index
    %44 = vector.load %arg4[%c0_28, %c0_29, %c0_30, %c0_31] : memref<1x1x16x8xbf16, #tpu.memory_space<vmem>>, vector<1x1x16x8xbf16>
    %45 = vector.shape_cast %44 : vector<1x1x16x8xbf16> to vector<16x8xbf16>
    %cst_32 = arith.constant dense<0.000000e+00> : vector<8x8xf32>
    %46 = tpu.matmul %43, %45, %cst_32 {dimension_numbers = #tpu.dot_dimension_numbers<[1], [0], [0], [1], [0, 0, 1, 1], [], []>} : vector<8x16xbf16>, vector<16x8xbf16>, vector<8x8xf32> -> vector<8x8xf32>
    %c0_33 = arith.constant 0 : index
    %c0_34 = arith.constant 0 : index
    %47 = vector.load %arg19[%c0_33, %c0_34] : memref<8x32xf32, #tpu.memory_space<vmem>>, vector<8x32xf32>
    %48 = arith.truncf %46 : vector<8x8xf32> to vector<8x8xbf16>
    %c0_35 = arith.constant 0 : index
    %c0_36 = arith.constant 0 : index
    %c0_37 = arith.constant 0 : index
    %49 = vector.load %arg9[%c0_35, %c0_36, %c0_37] : memref<1x8x32xbf16, #tpu.memory_space<vmem>>, vector<1x8x32xbf16>
    %50 = vector.shape_cast %49 : vector<1x8x32xbf16> to vector<8x32xbf16>
    %cst_38 = arith.constant dense<0.000000e+00> : vector<8x32xf32>
    %51 = tpu.matmul %48, %50, %cst_38 {dimension_numbers = #tpu.dot_dimension_numbers<[1], [0], [0], [1], [0, 0, 1, 1], [], []>} : vector<8x8xbf16>, vector<8x32xbf16>, vector<8x32xf32> -> vector<8x32xf32>
    %52 = arith.addf %47, %51 : vector<8x32xf32>
    %c0_39 = arith.constant 0 : index
    %c0_40 = arith.constant 0 : index
    %53 = vector.load %arg19[%c0_39, %c0_40] : memref<8x32xf32, #tpu.memory_space<vmem>>, vector<8x32xf32>
    tpu.vector_store %arg19[%c0_39, %c0_40], %52 {strides = array<i32>} : memref<8x32xf32, #tpu.memory_space<vmem>>, vector<8x32xf32>,
    %c3_i32 = arith.constant 3 : i32
    %54 = arith.cmpi eq, %arg1, %c3_i32 : i32
    %55 = arith.extui %54 : i1 to i32
    %c0_i32_41 = arith.constant 0 : i32
    %56 = arith.cmpi ne, %55, %c0_i32_41 : i32
    scf.if %56 {
      %c0_42 = arith.constant 0 : index
      %c0_43 = arith.constant 0 : index
      %57 = vector.load %arg19[%c0_42, %c0_43] : memref<8x32xf32, #tpu.memory_space<vmem>>, vector<8x32xf32>
      %c0_44 = arith.constant 0 : index
      %c0_45 = arith.constant 0 : index
      %58 = vector.load %arg10[%c0_44, %c0_45] : memref<1x32xf32, #tpu.memory_space<vmem>>, vector<1x32xf32>
      %59 = vector.broadcast %58 : vector<1x32xf32> to vector<8x32xf32>
      %60 = arith.addf %57, %59 : vector<8x32xf32>
      %61 = arith.addf %60, %3 : vector<8x32xf32>
      %c0_46 = arith.constant 0 : index
      %c0_47 = arith.constant 0 : index
      %62 = vector.load %arg11[%c0_46, %c0_47] : memref<1x32xf32, #tpu.memory_space<vmem>>, vector<1x32xf32>
      %c0_48 = arith.constant 0 : index
      %c0_49 = arith.constant 0 : index
      %63 = vector.load %arg12[%c0_48, %c0_49] : memref<1x32xf32, #tpu.memory_space<vmem>>, vector<1x32xf32>
      %cst_50 = arith.constant dense<0.000000e+00> : vector<8xf32>
      %64 = vector.multi_reduction <add>, %61, %cst_50 [1] : vector<8x32xf32> to vector<8xf32>
      %65 = vector.shape_cast %64 : vector<8xf32> to vector<8x1xf32>
      %cst_51 = arith.constant 3.200000e+01 : f32
      %66 = vector.broadcast %cst_51 : f32 to vector<8x1xf32>
      %67 = arith.divf %65, %66 : vector<8x1xf32>
      %68 = vector.broadcast %67 : vector<8x1xf32> to vector<8x32xf32>
      %69 = arith.subf %61, %68 : vector<8x32xf32>
      %70 = arith.mulf %69, %69 : vector<8x32xf32>
      %cst_52 = arith.constant dense<0.000000e+00> : vector<8xf32>
      %71 = vector.multi_reduction <add>, %70, %cst_52 [1] : vector<8x32xf32> to vector<8xf32>
      %72 = vector.shape_cast %71 : vector<8xf32> to vector<8x1xf32>
      %cst_53 = arith.constant 3.200000e+01 : f32
      %73 = vector.broadcast %cst_53 : f32 to vector<8x1xf32>
      %74 = arith.divf %72, %73 : vector<8x1xf32>
      %75 = vector.broadcast %67 : vector<8x1xf32> to vector<8x32xf32>
      %76 = arith.subf %61, %75 : vector<8x32xf32>
      %cst_54 = arith.constant 9.99999974E-6 : f32
      %77 = vector.broadcast %cst_54 : f32 to vector<8x1xf32>
      %78 = arith.addf %74, %77 : vector<8x1xf32>
      %79 = math.rsqrt %78 : vector<8x1xf32>
      %80 = vector.broadcast %79 : vector<8x1xf32> to vector<8x32xf32>
      %81 = arith.mulf %76, %80 : vector<8x32xf32>
      %82 = vector.broadcast %62 : vector<1x32xf32> to vector<8x32xf32>
      %83 = arith.mulf %81, %82 : vector<8x32xf32>
      %84 = vector.broadcast %63 : vector<1x32xf32> to vector<8x32xf32>
      %85 = arith.addf %83, %84 : vector<8x32xf32>
      %86 = arith.truncf %85 : vector<8x32xf32> to vector<8x32xbf16>
      %c0_55 = arith.constant 0 : index
      %c0_56 = arith.constant 0 : index
      %87 = vector.load %arg13[%c0_55, %c0_56] : memref<32x64xbf16, #tpu.memory_space<vmem>>, vector<32x64xbf16>
      %cst_57 = arith.constant dense<0.000000e+00> : vector<8x64xf32>
      %88 = tpu.matmul %86, %87, %cst_57 {dimension_numbers = #tpu.dot_dimension_numbers<[1], [0], [0], [1], [0, 0, 1, 1], [], []>} : vector<8x32xbf16>, vector<32x64xbf16>, vector<8x64xf32> -> vector<8x64xf32>
      %c0_58 = arith.constant 0 : index
      %c0_59 = arith.constant 0 : index
      %89 = vector.load %arg14[%c0_58, %c0_59] : memref<1x64xf32, #tpu.memory_space<vmem>>, vector<1x64xf32>
      %90 = vector.broadcast %89 : vector<1x64xf32> to vector<8x64xf32>
      %91 = arith.addf %88, %90 : vector<8x64xf32>
      %cst_60 = arith.constant 0.000000e+00 : f32
      %92 = vector.broadcast %cst_60 : f32 to vector<8x64xf32>
      %93 = arith.maximumf %91, %92 : vector<8x64xf32>
      %94 = arith.truncf %93 : vector<8x64xf32> to vector<8x64xbf16>
      %c0_61 = arith.constant 0 : index
      %c0_62 = arith.constant 0 : index
      %95 = vector.load %arg15[%c0_61, %c0_62] : memref<64x32xbf16, #tpu.memory_space<vmem>>, vector<64x32xbf16>
      %cst_63 = arith.constant dense<0.000000e+00> : vector<8x32xf32>
      %96 = tpu.matmul %94, %95, %cst_63 {dimension_numbers = #tpu.dot_dimension_numbers<[1], [0], [0], [1], [0, 0, 1, 1], [], []>} : vector<8x64xbf16>, vector<64x32xbf16>, vector<8x32xf32> -> vector<8x32xf32>
      %c0_64 = arith.constant 0 : index
      %c0_65 = arith.constant 0 : index
      %97 = vector.load %arg16[%c0_64, %c0_65] : memref<1x32xf32, #tpu.memory_space<vmem>>, vector<1x32xf32>
      %98 = vector.broadcast %97 : vector<1x32xf32> to vector<8x32xf32>
      %99 = arith.addf %96, %98 : vector<8x32xf32>
      %100 = arith.addf %99, %85 : vector<8x32xf32>
      %c0_66 = arith.constant 0 : index
      %c0_67 = arith.constant 0 : index
      %101 = vector.load %arg11[%c0_66, %c0_67] : memref<1x32xf32, #tpu.memory_space<vmem>>, vector<1x32xf32>
      %c0_68 = arith.constant 0 : index
      %c0_69 = arith.constant 0 : index
      %102 = vector.load %arg12[%c0_68, %c0_69] : memref<1x32xf32, #tpu.memory_space<vmem>>, vector<1x32xf32>
      %cst_70 = arith.constant dense<0.000000e+00> : vector<8xf32>
      %103 = vector.multi_reduction <add>, %100, %cst_70 [1] : vector<8x32xf32> to vector<8xf32>
      %104 = vector.shape_cast %103 : vector<8xf32> to vector<8x1xf32>
      %cst_71 = arith.constant 3.200000e+01 : f32
      %105 = vector.broadcast %cst_71 : f32 to vector<8x1xf32>
      %106 = arith.divf %104, %105 : vector<8x1xf32>
      %107 = vector.broadcast %106 : vector<8x1xf32> to vector<8x32xf32>
      %108 = arith.subf %100, %107 : vector<8x32xf32>
      %109 = arith.mulf %108, %108 : vector<8x32xf32>
      %cst_72 = arith.constant dense<0.000000e+00> : vector<8xf32>
      %110 = vector.multi_reduction <add>, %109, %cst_72 [1] : vector<8x32xf32> to vector<8xf32>
      %111 = vector.shape_cast %110 : vector<8xf32> to vector<8x1xf32>
      %cst_73 = arith.constant 3.200000e+01 : f32
      %112 = vector.broadcast %cst_73 : f32 to vector<8x1xf32>
      %113 = arith.divf %111, %112 : vector<8x1xf32>
      %114 = vector.broadcast %106 : vector<8x1xf32> to vector<8x32xf32>
      %115 = arith.subf %100, %114 : vector<8x32xf32>
      %cst_74 = arith.constant 9.99999974E-6 : f32
      %116 = vector.broadcast %cst_74 : f32 to vector<8x1xf32>
      %117 = arith.addf %113, %116 : vector<8x1xf32>
      %118 = math.rsqrt %117 : vector<8x1xf32>
      %119 = vector.broadcast %118 : vector<8x1xf32> to vector<8x32xf32>
      %120 = arith.mulf %115, %119 : vector<8x32xf32>
      %121 = vector.broadcast %101 : vector<1x32xf32> to vector<8x32xf32>
      %122 = arith.mulf %120, %121 : vector<8x32xf32>
      %123 = vector.broadcast %102 : vector<1x32xf32> to vector<8x32xf32>
      %124 = arith.addf %122, %123 : vector<8x32xf32>
      %c0_75 = arith.constant 0 : index
      %c0_76 = arith.constant 0 : index
      %125 = vector.load %arg17[%c0_75, %c0_76] : memref<8x32xf32, #tpu.memory_space<vmem>>, vector<8x32xf32>
      tpu.vector_store %arg17[%c0_75, %c0_76], %124 {strides = array<i32>} : memref<8x32xf32, #tpu.memory_space<vmem>>, vector<8x32xf32>,
      %cst_77 = arith.constant 0.000000e+00 : f32
      %126 = vector.broadcast %cst_77 : f32 to vector<1x128xf32>
      %c0_78 = arith.constant 0 : index
      %c0_79 = arith.constant 0 : index
      %c0_80 = arith.constant 0 : index
      %127 = vector.load %arg18[%c0_78, %c0_79, %c0_80] : memref<1x1x128xf32, #tpu.memory_space<vmem>>, vector<1x1x128xf32>
      %128 = vector.shape_cast %127 : vector<1x1x128xf32> to vector<1x128xf32>
      %129 = vector.shape_cast %126 : vector<1x128xf32> to vector<1x1x128xf32>
      tpu.vector_store %arg18[%c0_78, %c0_79, %c0_80], %129 {strides = array<i32>} : memref<1x1x128xf32, #tpu.memory_space<vmem>>, vector<1x1x128xf32>,
      %c0_81 = arith.constant 0 : index
      %c0_82 = arith.constant 0 : index
      %130 = vector.load %arg20[%c0_81, %c0_82] : memref<1x16xf32, #tpu.memory_space<vmem>>, vector<1x16xf32>
      %c0_83 = arith.constant 0 : index
      %c0_84 = arith.constant 0 : index
      %c0_85 = arith.constant 0 : index
      %131 = vector.load %arg18[%c0_83, %c0_84, %c0_85] : memref<1x1x128xf32, #tpu.memory_space<vmem>>, vector<1x1x16xf32>
      %132 = vector.shape_cast %131 : vector<1x1x16xf32> to vector<1x16xf32>
      %133 = vector.shape_cast %130 : vector<1x16xf32> to vector<1x1x16xf32>
      tpu.vector_store %arg18[%c0_83, %c0_84, %c0_85], %133 {strides = array<i32>} : memref<1x1x128xf32, #tpu.memory_space<vmem>>, vector<1x1x16xf32>,
    } else {
    }
    return
  }
  func.func @transform_0(%arg0: i32, %arg1: i32) -> (i32, i32) {
    %c0_i32 = arith.constant 0 : i32
    %c0_i32_0 = arith.constant 0 : i32
    return %arg0, %c0_i32 : i32, i32
  }
  func.func @transform_1(%arg0: i32, %arg1: i32) -> (i32, i32, i32, i32) {
    %c0_i32 = arith.constant 0 : i32
    %c0_i32_0 = arith.constant 0 : i32
    %c0_i32_1 = arith.constant 0 : i32
    return %arg0, %arg1, %c0_i32, %c0_i32_0 : i32, i32, i32, i32
  }
  func.func @transform_2(%arg0: i32, %arg1: i32) -> (i32, i32, i32, i32) {
    %c0_i32 = arith.constant 0 : i32
    %c0_i32_0 = arith.constant 0 : i32
    %c0_i32_1 = arith.constant 0 : i32
    return %arg0, %arg1, %c0_i32, %c0_i32_0 : i32, i32, i32, i32
  }
  func.func @transform_3(%arg0: i32, %arg1: i32) -> (i32, i32, i32) {
    %c0_i32 = arith.constant 0 : i32
    %c0_i32_0 = arith.constant 0 : i32
    %c0_i32_1 = arith.constant 0 : i32
    return %arg0, %c0_i32, %c0_i32_0 : i32, i32, i32
  }
  func.func @transform_4(%arg0: i32, %arg1: i32) -> (i32, i32, i32) {
    %c0_i32 = arith.constant 0 : i32
    %c0_i32_0 = arith.constant 0 : i32
    %c0_i32_1 = arith.constant 0 : i32
    return %arg0, %c0_i32, %c0_i32_0 : i32, i32, i32
  }
  func.func @transform_5(%arg0: i32, %arg1: i32) -> (i32, i32, i32) {
    %c0_i32 = arith.constant 0 : i32
    %c0_i32_0 = arith.constant 0 : i32
    %c0_i32_1 = arith.constant 0 : i32
    return %arg1, %c0_i32, %c0_i32_0 : i32, i32, i32
  }
  func.func @transform_6(%arg0: i32, %arg1: i32) -> (i32, i32, i32) {
    %c0_i32 = arith.constant 0 : i32
    %c0_i32_0 = arith.constant 0 : i32
    %c0_i32_1 = arith.constant 0 : i32
    return %arg1, %c0_i32, %c0_i32_0 : i32, i32, i32
  }
  func.func @transform_7(%arg0: i32, %arg1: i32) -> (i32, i32, i32) {
    %c0_i32 = arith.constant 0 : i32
    %c0_i32_0 = arith.constant 0 : i32
    %c0_i32_1 = arith.constant 0 : i32
    return %arg1, %c0_i32, %c0_i32_0 : i32, i32, i32
  }
  func.func @transform_8(%arg0: i32, %arg1: i32) -> (i32, i32) {
    %c0_i32 = arith.constant 0 : i32
    %c0_i32_0 = arith.constant 0 : i32
    %c0_i32_1 = arith.constant 0 : i32
    return %c0_i32, %c0_i32_0 : i32, i32
  }
  func.func @transform_9(%arg0: i32, %arg1: i32) -> (i32, i32) {
    %c0_i32 = arith.constant 0 : i32
    %c0_i32_0 = arith.constant 0 : i32
    %c0_i32_1 = arith.constant 0 : i32
    return %c0_i32, %c0_i32_0 : i32, i32
  }
  func.func @transform_10(%arg0: i32, %arg1: i32) -> (i32, i32) {
    %c0_i32 = arith.constant 0 : i32
    %c0_i32_0 = arith.constant 0 : i32
    %c0_i32_1 = arith.constant 0 : i32
    return %c0_i32, %c0_i32_0 : i32, i32
  }
  func.func @transform_11(%arg0: i32, %arg1: i32) -> (i32, i32) {
    %c0_i32 = arith.constant 0 : i32
    %c0_i32_0 = arith.constant 0 : i32
    %c0_i32_1 = arith.constant 0 : i32
    return %c0_i32, %c0_i32_0 : i32, i32
  }
  func.func @transform_12(%arg0: i32, %arg1: i32) -> (i32, i32) {
    %c0_i32 = arith.constant 0 : i32
    %c0_i32_0 = arith.constant 0 : i32
    %c0_i32_1 = arith.constant 0 : i32
    return %c0_i32, %c0_i32_0 : i32, i32
  }
  func.func @transform_13(%arg0: i32, %arg1: i32) -> (i32, i32) {
    %c0_i32 = arith.constant 0 : i32
    %c0_i32_0 = arith.constant 0 : i32
    %c0_i32_1 = arith.constant 0 : i32
    return %c0_i32, %c0_i32_0 : i32, i32
  }
  func.func @transform_14(%arg0: i32, %arg1: i32) -> (i32, i32) {
    %c0_i32 = arith.constant 0 : i32
    %c0_i32_0 = arith.constant 0 : i32
    %c0_i32_1 = arith.constant 0 : i32
    return %c0_i32, %c0_i32_0 : i32, i32
  }
  func.func @transform_15(%arg0: i32, %arg1: i32) -> (i32, i32) {
    %c0_i32 = arith.constant 0 : i32
    %c0_i32_0 = arith.constant 0 : i32
    return %arg0, %c0_i32 : i32, i32
  }
  func.func @transform_16(%arg0: i32, %arg1: i32) -> (i32, i32, i32) {
    %c0_i32 = arith.constant 0 : i32
    %c0_i32_0 = arith.constant 0 : i32
    %c0_i32_1 = arith.constant 0 : i32
    return %arg0, %c0_i32, %c0_i32_0 : i32, i32, i32
  }
}

</mosaic_0001>

<bundles_post_ra>
// kernel: decoder2d_pallas.1
= control target key start
LH: loop header
LB: loop body
LE: loop exit
PB: predicated region body
PF: predicated region fallthrough
CT: control target
= control target key end

     0   :  { %s2106_s0 = inlined_call_operand.vmem [shape: f32[16,32], index: 0, kind: input, shape index: {}]   ;;  %s2107_s1 = inlined_call_operand.vmem [shape: bf16[2,4,16,8], index: 1, kind: input, shape index: {}]   ;;  %s2108_s2 = inlined_call_operand.vmem [shape: bf16[2,4,16,8], index: 2, kind: input, shape index: {}]   ;;  %s2109_s3 = inlined_call_operand.vmem [shape: f32[2,1,16], index: 3, kind: input, shape index: {}]   ;;  %s2110_s4 = inlined_call_operand.vmem [shape: f32[2,8,1], index: 4, kind: input, shape index: {}]   ;;  %s2111_s5 = inlined_call_operand.vmem [shape: bf16[4,32,8], index: 5, kind: input, shape index: {}]   ;;  %s2112_s6 = inlined_call_operand.vmem [shape: f32[4,1,8], index: 6, kind: input, shape index: {}]   ;;  %s2113_s7 = inlined_call_operand.vmem [shape: bf16[4,8,32], index: 7, kind: input, shape index: {}]   ;;  %s2114_s8 = inlined_call_operand.vmem [shape: f32[1,32], index: 8, kind: input, shape index: {}]   ;;  %s2115_s9 = inlined_call_operand.vmem [shape: f32[1,32], index: 9, kind: input, shape index: {}]   ;;  %s2116_s10 = inlined_call_operand.vmem [shape: f32[1,32], index: 10, kind: input, shape index: {}]   ;;  %s2117_s11 = inlined_call_operand.vmem [shape: bf16[32,64], index: 11, kind: input, shape index: {}]   ;;  %s2118_s12 = inlined_call_operand.vmem [shape: f32[1,64], index: 12, kind: input, shape index: {}]   ;;  %s2119_s13 = inlined_call_operand.vmem [shape: bf16[64,32], index: 13, kind: input, shape index: {}]   ;;  %s2120_s14 = inlined_call_operand.vmem [shape: f32[1,32], index: 14, kind: input, shape index: {}]   ;;  %s2121_s15 = inlined_call_operand.hbm [shape: f32[16,32], index: 15, kind: output, shape index: {0}]   ;;  %s2122_s16 = inlined_call_operand.hbm [shape: f32[2,1,128], index: 16, kind: output, shape index: {1}]  }
   0x1   :  { %2140 = sst [smem:[#allocation22_spill]] %s2106_s0 }
   0x2   :  { %2141 = sst [smem:[#allocation23_spill]] %s2110_s4 }
   0x3   :  { %2142 = sst [smem:[#allocation24_spill]] %s2114_s8 }
   0x4   :  { %2143 = sst [smem:[#allocation25_spill]] %s2115_s9 }
   0x5   :  { %2144 = sst [smem:[#allocation26_spill]] %s2116_s10 }
   0x6   :  { %2145 = sst [smem:[#allocation27_spill]] %s2117_s11 }
   0x7   :  { %2146 = sst [smem:[#allocation28_spill]] %s2118_s12 }
   0x8   :  { %2147 = sst [smem:[#allocation29_spill]] %s2119_s13 }
   0x9   :  { %2148 = sst [smem:[#allocation30_spill]] %s2120_s14 }
   0xa   :  { %2149 = sst [smem:[#allocation31_spill]] %s2121_s15 }
   0xb   :  { %2150 = sst [smem:[#allocation32_spill]] %s2122_s16 }
   0xc   :  { %22 = vsyncpa [#allocation5], 0 }
   0xd   :  { %24 = vsyncpa [#allocation5 + $0x1], 0 }
   0xe   :  { %25 = vsyncpa [#allocation7], 0 }
   0xf   :  { %27 = vsyncpa [#allocation7 + $0x1], 0  ;;  %s1836_s21 = smov 0   ;;  %s1838_s22 = smov 0  }
  0x10   :  { %s1840_s23 = smov 0   ;;  %s1842_s24 = smov 0  }
  0x11   :  { %s1844_s25 = smov 0   ;;  %s1846_s26 = smov 0  }
  0x12   :  { %s1848_s27 = smov 0   ;;  %s1850_s28 = smov 0  }
  0x13 LB: > { %2151 = sst [smem:[#allocation10_spill]] %s1713_s21  ;;  %s1407_s29 = sadd.s32 4294967295, %s1741_s28   ;;  %s1741_s28 = sphi %s1850_s28, %s33_s28   ;;  %s1737_s27 = sphi %s1848_s27, %s2191_s27   ;;  %s1733_s26 = sphi %s1846_s26, %s2190_s26   ;;  %s1729_s25 = sphi %s1844_s25, %s2189_s25   ;;  %s1725_s24 = sphi %s1842_s24, %s2188_s24   ;;  %s1721_s23 = sphi %s1840_s23, %s2187_s23   ;;  %s1717_s22 = sphi %s1838_s22, %s2186_s22   ;;  %s1713_s21 = sphi %s1836_s21, %s2185_s21  }
  0x14   : > { %2152 = sst [smem:[#allocation11_spill]] %s1717_s22  ;;  %s1408_s30 = sadd.s32 4294967294, %s1741_s28  }
  0x15   : > { %2153 = sst [smem:[#allocation12_spill]] %s1721_s23  ;;  %s42_s0 = sadd.s32 1, %s1733_s26 }
  0x16   : > { %2154 = sst [smem:[#allocation13_spill]] %s1729_s25  ;;  %p43_p0 = scmp.ge.s32.totalorder %s42_s0, 4 }
  0x17   : > { %2155 = sst [smem:[#allocation14_spill]] %s1733_s26  ;;  %s45_s17 = sadd.s32 1, %s1737_s27 }
  0x18   : > { %2156 = sst [smem:[#allocation15_spill]] %s1737_s27  ;;  %p421_p1 = scmp.ne.s32.totalorder %s1721_s23, %s1717_s22 }
  0x19   : > { %2157 = sst [smem:[#allocation16_spill]] %s1741_s28  ;;  %p422_p2 = scmp.eq.s32.totalorder %s1407_s29, 7 }
  0x1a   : > { %s2193_s0 = smov (%p43_p0, %s42_s0), 0  ;;  %s2195_s17 = smov (!%p43_p0, %s45_s17), %s1737_s27 }
  0x1b   : > { %2158 = sst [smem:[#allocation17_spill]] %s2193_s0  ;;  %p1885_p3 = por %p422_p2, %p421_p1 }
  0x1c   : > { %p427_p4 = scmp.ne.s32.totalorder %s1717_s22, %s1713_s21  ;;  %p47_p5 = scmp.ge.s32.totalorder %s2195_s17, 2 }
  0x1d   : > { %s2159_s18 = scalar_select %p1885_p3, 1, 0 }
  0x1e   : > { %p428_p6 = scmp.eq.s32.totalorder %s1408_s30, 7  ;;  %p1411_p7 = scmp.ge.s32.totalorder %s1741_s28, 1 }
  0x1f   : > { %2160 = sst [smem:[#allocation18_spill]] %s2159_s18  ;;  %p558_p8 = scmp.lt.s32.totalorder %s1741_s28, 9 }
  0x20   : > { %s2197_s17 = smov (%p47_p5, %s2195_s17), 0  ;;  %p1895_p9 = por %p428_p6, %p427_p4 }
  0x21   : > { %2161 = sst [smem:[#allocation19_spill]] %s2197_s17  ;;  %p559_p10 = pnand %p1411_p7, %p558_p8 }
  0x22   : > { %s2162_s19 = scalar_select %p1895_p9, 1, 0 }
  0x23   : > { %s408_s20 = ssub.s32 %s1737_s27, %s2197_s17  ;;  %s411_s29 = sadd.s32 1, %s1721_s23 }
  0x24   : > { %2163 = sst [smem:[#allocation20_spill]] %s2162_s19  ;;  %p409_p11 = scmp.eq.s32.totalorder %s408_s20, 0 }
  0x25   : > { %562 = sbr.rel (%p559_p10) target bundleno = 2242 (0x8c2), region = 80  ;;  %s1906_s30 = sand.u32 (!%p559_p10), 1, %s1717_s22  }
  0x26   : > { %s1903_s0 = scalar_select %p409_p11, %s1721_s23, %s411_s29  }
  0x27   : > { %p648_p12 = scmp.lt.s32.totalorder (!%p559_p10), %s1729_s25, 1  ;;  %s1412_s26 = sshll.u32 (!%p559_p10), %s1906_s30, 3 }
  0x28   : > { %2164 = sst [smem:[#allocation21_spill]] %s1903_s0  ;;  %p654_p13 = scmp.lt.s32.totalorder (!%p559_p10), %s1725_s24, 3 }
  0x29   : > { %s2165_s19 = sld [smem:[#allocation22_spill]] (!%p559_p10)  ;;  %s1956_s9 = scalar_lea.vmem (!%p559_p10), [#allocation4], %s1412_s26 }
  0x2a   : > { %s1912_s21 = scalar_select %p648_p12, %s1729_s25, 1 }
  0x2b   : > { %s1915_s17 = scalar_select %p654_p13, %s1725_s24, 3 }
  0x2c   : > { %s1918_s20 = sshll.u32 %s1912_s21, 3  ;;  %s1959_s13 = scalar_lea.vmem [#allocation6], %s1906_s30 }
  0x2d   : > { %s1414_s16 = sshll.u32 %s1915_s17, 1  ;;  %s1453_s10 = sshll.u32 %s1915_s17, 4 }
  0x2e   : > { %s658_s15 = sadd.s32 %s1414_s16, %s1918_s20  ;;  %s681_s23 = scalar_lea.vmem %s2111_s5, %s1453_s10 }
  0x2f   : > { %s651_s28 = scalar_lea.vmem %s2165_s19, %s1918_s20  ;;  %s1416_s12 = sshll.u32 %s658_s15, 2 }
  0x30   : > { %s660_s27 = scalar_lea.vmem %s2107_s1, %s1416_s12  ;;  %s1941_s0 = scalar_lea.vmem %s2108_s2, %s1416_s12 }
  0x31   : > { %s684_s25 = scalar_lea.vmem %s2112_s6, %s1915_s17  ;;  %s1423_s18 = sshll.u32 %s1915_s17, 2 }
  0x32   : > { %s1954_s4 = scalar_lea.vmem %s2113_s7, %s1423_s18  ;;  %p1424_p0 = scmp.ne.s32.totalorder %s1725_s24, 0 }
  0x34   : > { %693 = sbr.rel (%p1424_p0) target bundleno = 60 (0x3c), region = 84 }
  0x39   : > { %vm694_vm0 = vcmask 261120   ;;  %vm696_vm1 = vcmask 122880   ;;  %v1743_v0 = vmov 0.0  }
  0x3a   : > { %695 = vst.msk [vmem:[#allocation2] sm:$0xff] %vm694_vm0, %v1743_v0 }
  0x3b   : > { %697 = vst.msk [vmem:[#allocation3] sm:$0x1] %vm696_vm1, %v1743_v0 }
  0x3c PF: > { %v1601_v1 = vld [vmem:[%s681_s23 + $0x8] sm:$0xff]   ;;  %v1744_v2 = vmov 0.0   ;;  %v1602_v3 = vld [vmem:[%s681_s23] sm:$0xff]   ;;  %vm1745_vm2 = vmmov 0   ;;  %vm775_vm3 = vcmask 64512   ;;  %vm723_vm4 = vcmask 261120   ;;  %s2167_s14 = scalar_lea.vmem %s2109_s3, %s1912_s21 }
  0x3d   : > { %1471 = vmatprep.subr.bf16.mxu0 %v1744_v2  ;;  %1479 = vmatprep.subr.bf16.mxu1 %v1744_v2  ;;  %v1963_v4 = vld [vmem:[%s651_s28] sm:$0xff]  ;;  %v826_v15 = vlaneseq  ;;  %vm832_vm5 = vcmask 130048   ;;  %s2168_s21 = sld [smem:[#allocation23_spill]]  ;;  %v1746_v29 = vmov 0   ;;  %vm920_vm6 = vcmask 1043456   ;;  %p1434_p1 = scmp.ne.s32.totalorder %s1725_s24, 3 }
  0x3e   : > { %1472 = vmatpush3.bf16.msra.mxu0 %v1601_v1  ;;  %1475 = vmatprep.mubr.msk.bf16.mxu0 %vm1745_vm2, %v1744_v2  ;;  %v1603_v5 = vld [vmem:[%s660_s27] sm:$0xff]   ;;  %v699_v6 = vpack.c.bf16 %v1963_v4, %v1963_v4  ;;  %vm860_vm7 = vcmask 122880   ;;  %s2171_s29 = sld [smem:[#allocation27_spill]] (!%p1434_p1) }
  0x3f   : > { %1473 = vmatprep.subr.bf16.mxu0 %v1744_v2  ;;  %1481 = vmatprep.mubr.msk.bf16.mxu1 %vm1745_vm2, %v1744_v2  ;;  %v780_v7 = vsel %vm775_vm3, %v1603_v5, 0  ;;  %v1425_v8 = vld [vmem:[%s684_s25] ss:$0 sm:$0xff]  ;;  %v827_v18 = vshrl.u32 %v826_v15, 7  ;;  %s2172_s25 = sld [smem:[#allocation29_spill]] (!%p1434_p1) }
  0x40   : > { %1480 = vmatpush3.bf16.xpose.msra.mxu1 %v780_v7  ;;  %v822_v16 = vld [vmem:[%s2167_s14] sm:$0x1]  ;;  %1599 = vset.pattern.permute.xlu1 %v1746_v29  ;;  %s2174_s12 = sld [smem:[#allocation25_spill]] (!%p1434_p1) }
  0x41   : > { %1491 = vmatprep.subr.bf16.mxu1 %v1744_v2  ;;  %v823_v17 = vsub.f32 1.0, %v822_v16  ;;  %v828_v20 = vsub.s32 0, %v827_v18  ;;  %1600 = vset.pattern.permute.xlu0 %v1746_v29  ;;  %v1604_v35 = vld [vmem:[%s1941_s0] sm:$0xff]   ;;  %s2175_s28 = sld [smem:[#allocation26_spill]] (!%p1434_p1) }
  0x42   : > { %1474 = vmatpush3.bf16.msra.mxu0 %v1602_v3  ;;  %v916_v36 = vld [vmem:[%s1954_s4] sm:$0xf]  ;;  %v851_v50 = vld [vmem:[#allocation3] sm:$0x1]  ;;  %s2176_s27 = sld [smem:[#allocation28_spill]] (!%p1434_p1) }
  0x43   : > { %1485 = vmatprep.subr.bf16.mxu0 %v1744_v2  ;;  %v824_v19 = vmul.f32 100000.0, %v823_v17  ;;  %s2169_s17 = scalar_lea.vmem %s2168_s21, %s1918_s20  ;;  %v922_v37 = vsel %vm920_vm6, %v916_v36, 0  ;;  %v914_v58 = vld [vmem:[#allocation2] sm:$0xff]  ;;  %s2170_s20 = sld [smem:[#allocation24_spill]] (!%p1434_p1) }
  0x44   : > { %v844_v28 = vld [vmem:[%s2169_s17] sm:$0xff]  ;;  %s2177_s16 = sld [smem:[#allocation30_spill]] (!%p1434_p1) }
  0x45   : > { %1476 = vmatmul.mubr.msk.bf16.vlgmr.msra.gmra.mxu0 %vm723_vm4, %v699_v6  ;;  %v829_v21 = vrot.slane %v824_v19, %v828_v20  ;;  %847 = vperm.xlu1 %1599, %v844_v28   ;;  %s2173_s18 = smov (!%p1434_p1), %s2172_s25 }
  0x46   : > { %1487 = vmatprep.mubr.msk.bf16.mxu0 %vm1745_vm2, %v1744_v2  ;;  %1486 = vmatpush3.bf16.msra.mxu0 %v1604_v35 }
  0xc0   : > { %v848_v40 = vpop.permute.xlu1 %847 }
 0x105   : > { %v761_v9 = vpop.f32.mrf.mxu0 }
 0x106   : > { %v762_v10 = vadd.f32 %v1425_v8, %v761_v9 }
 0x107   : > { %v1477_v11 = vpop.f32.mrf.mxu0 }
 0x108   : > { %v767_v12 = vpack.c.bf16 %v762_v10, %v762_v10 }
 0x109   : > { %v764_v13 = vpop.f32.mrf.mxu0 }
 0x10a   : > { %1482 = vmatmul.mubr.msk.bf16.vlgmr.msra.gmra.mxu1 %vm775_vm3, %v767_v12 }
 0x10b   : > { %v1478_v14 = vpop.f32.mrf.mxu0  ;;  %1493 = vmatprep.mubr.msk.bf16.mxu1 %vm1745_vm2, %v1744_v2  ;;  %1492 = vmatpush3.bf16.msra.mxu1 %v922_v37 }
 0x1ca   : > { %v816_v22 = vpop.f32.mrf.mxu1 }
 0x1cb   : > { %v831_v23 = vsub.f32 %v816_v22, %v829_v21 }
 0x1cc   : > { %v1483_v24 = vpop.f32.mrf.mxu1 }
 0x1cd   : > { %v833_v25 = vsel %vm832_vm5, %v831_v23, -inf }
 0x1ce   : > { %834 = vmax.xlane.f32.xlu0 %v833_v25  ;;  %v819_v26 = vpop.f32.mrf.mxu1 }
 0x1d0   : > { %v1484_v27 = vpop.f32.mrf.mxu1 }
 0x257   : > { %v835_v30 = vpop.xlane.xlu0 %834 }
 0x258   : > { %v836_v31 = vsub.f32 %v831_v23, %v835_v30 }
 0x25a   : > { %v837_v32 = vmul.f32 1.442695, %v836_v31 }
 0x25c   : > { %1605 = vpow2.f32 %v837_v32 }
 0x269   : > { %v1606_v33 = vpop.eup %1605 }
 0x26a   : > { %v839_v34 = vsel %vm832_vm5, %v1606_v33, 0.0 }
 0x26b   : > { %840 = vadd.xlane.f32.xlu0 %v839_v34 }
 0x2f4   : > { %v841_v38 = vpop.xlane.xlu0 %840 }
 0x2f5   : > { %1607 = vrcp.f32 %v841_v38 }
 0x302   : > { %v1608_v39 = vpop.eup %1607 }
 0x303   : > { %v843_v41 = vmul.f32 %v1608_v39, %v1606_v33 }
 0x305   : > { %v850_v42 = vmul.f32 %v848_v40, %v843_v41 }
 0x307   : > { %v852_v43 = vsel %vm832_vm5, %v850_v42, -inf  ;;  %v862_v44 = vpack.c.bf16 %v850_v42, %v850_v42 }
 0x308   : > { %v853_v45 = vrot.slane %v852_v43, 4 }
 0x309   : > { %1488 = vmatmul.mubr.msk.bf16.vlgmr.msra.gmra.mxu0 %vm832_vm5, %v862_v44 }
 0x30a   : > { %v854_v46 = vmax.f32 %v852_v43, %v853_v45 }
 0x30c   : > { %v855_v47 = vrot.slane %v854_v46, 2 }
 0x30e   : > { %v856_v48 = vmax.f32 %v854_v46, %v855_v47 }
 0x310   : > { %v857_v49 = vrot.slane %v856_v48, 1 }
 0x312   : > { %v858_v51 = vmax.f32 %v856_v48, %v857_v49 }
 0x314   : > { %v859_v52 = vadd.f32 %v858_v51, %v851_v50 }
 0x316   : > { %861 = vst.msk [vmem:[#allocation3] sm:$0x1] %vm860_vm7, %v859_v52 }
 0x3c9   : > { %v908_v53 = vpop.f32.mrf.mxu0 }
 0x3ca   : > { %v915_v54 = vpack.c.bf16 %v908_v53, %v908_v53 }
 0x3cb   : > { %v1489_v55 = vpop.f32.mrf.mxu0 }
 0x3cc   : > { %1494 = vmatmul.mubr.msk.bf16.vlgmr.msra.gmra.mxu1 %vm775_vm3, %v915_v54 }
 0x3cd   : > { %v911_v56 = vpop.f32.mrf.mxu0 }
 0x3cf   : > { %v1490_v57 = vpop.f32.mrf.mxu0 }
 0x48c   : > { %v958_v59 = vpop.f32.mrf.mxu1 }
 0x48d   : > { %v964_v60 = vadd.f32 %v958_v59, %v914_v58 }
 0x48e   : > { %v1495_v61 = vpop.f32.mrf.mxu1  ;;  %969 = sbr.rel (%p1434_p1) target bundleno = 2194 (0x892), region = 88 }
 0x48f   : > { %965 = vst.msk [vmem:[#allocation2] sm:$0xff] %vm723_vm4, %v964_v60 }
 0x490   : > { %v961_v62 = vpop.f32.mrf.mxu1 }
 0x492   : > { %v1496_v63 = vpop.f32.mrf.mxu1 }
 0x493   : > { %v1435_v1 = vld [vmem:[%s2170_s20] ss:$0 sm:$0xff]  ;;  %v1180_v11 = vld [vmem:[#allocation3] sm:$0x1]  ;;  %v1747_v13 = vmov 0.0   ;;  %vm1748_vm8 = vmmov 0  }
 0x494   : > { %v1609_v12 = vld [vmem:[%s2171_s29 + $0x8] sm:$0xff]   ;;  %1497 = vmatprep.subr.bf16.mxu0 %v1747_v13  ;;  %1179 = vst [vmem:[%s1959_s13] sm:$0x1] %v1747_v13  ;;  %1501 = vmatprep.mubr.msk.bf16.mxu0 %vm1748_vm8, %v1747_v13  ;;  %v1611_v14 = vld [vmem:[%s2172_s25 + $0x18] sm:$0xff]   ;;  %v1612_v15 = vld [vmem:[%s2173_s18 + $0x10] sm:$0xff]   ;;  %vm1118_vm9 = vcmask 523264  }
 0x495   : > { %1181 = vst.msk [vmem:[%s1959_s13] sm:$0x1] %vm860_vm7, %v1180_v11  ;;  %1498 = vmatpush3.bf16.msra.mxu0 %v1609_v12  ;;  %1505 = vmatprep.subr.bf16.mxu1 %v1747_v13  ;;  %v1436_v20 = vld [vmem:[%s2174_s12] ss:$0 sm:$0xff]  ;;  %v1613_v26 = vld [vmem:[%s2173_s18 + $0x8] sm:$0xff]  }
 0x496   : > { %v970_v0 = vld [vmem:[#allocation2] sm:$0xff]  ;;  %1499 = vmatprep.subr.bf16.mxu0 %v1747_v13  ;;  %1513 = vmatprep.mubr.msk.bf16.mxu1 %vm1748_vm8, %v1747_v13 }
 0x497   : > { %v978_v2 = vadd.f32 %v1435_v1, %v970_v0  ;;  %1506 = vmatpush3.bf16.msra.mxu1 %v1611_v14  ;;  %v1437_v22 = vld [vmem:[%s2175_s28] ss:$0 sm:$0xff] }
 0x498   : > { %1507 = vmatprep.subr.bf16.mxu1 %v1747_v13  ;;  %v1614_v27 = vld [vmem:[%s2173_s18] sm:$0xff]  }
 0x499   : > { %v979_v3 = vadd.f32 %v978_v2, %v1963_v4  ;;  %v1610_v4 = vld [vmem:[%s2171_s29] sm:$0xff]  }
 0x49a   : > { %1500 = vmatpush3.bf16.msra.mxu0 %v1610_v4  ;;  %v1438_v28 = vld [vmem:[%s2176_s27] ss:$0 sm:$0xff] }
 0x49b   : > { %v982_v5 = vsel %vm723_vm4, %v979_v3, 0.0  ;;  %1508 = vmatpush3.bf16.msra.mxu1 %v1612_v15  ;;  %v1442_v36 = vld [vmem:[%s2177_s16] ss:$0 sm:$0xff] }
 0x49c   : > { %983 = vadd.xlane.f32.xlu0 %v982_v5  ;;  %1509 = vmatprep.subr.bf16.mxu1 %v1747_v13 }
 0x49f   : > { %1510 = vmatpush3.bf16.msra.mxu1 %v1613_v26 }
 0x4a0   : > { %1511 = vmatprep.subr.bf16.mxu1 %v1747_v13 }
 0x4a3   : > { %1512 = vmatpush3.bf16.msra.mxu1 %v1614_v27 }
 0x525   : > { %v984_v6 = vpop.xlane.xlu0 %983 }
 0x526   : > { %v986_v7 = vmul.f32 0.03125, %v984_v6 }
 0x528   : > { %v987_v8 = vsub.f32 %v979_v3, %v986_v7 }
 0x52a   : > { %v988_v9 = vmul.f32 %v987_v8, %v987_v8 }
 0x52c   : > { %v989_v10 = vsel %vm723_vm4, %v988_v9, 0.0 }
 0x52d   : > { %990 = vadd.xlane.f32.xlu0 %v989_v10 }
 0x5b6   : > { %v991_v16 = vpop.xlane.xlu0 %990 }
 0x5b7   : > { %v992_v17 = vmul.f32 0.03125, %v991_v16 }
 0x5b9   : > { %v993_v18 = vadd.f32 1e-05, %v992_v17 }
 0x5bb   : > { %1615 = vrsqrt.f32 %v993_v18 }
 0x5c8   : > { %v1616_v19 = vpop.eup %1615 }
 0x5c9   : > { %v995_v21 = vmul.f32 %v1616_v19, %v987_v8 }
 0x5cb   : > { %v1002_v23 = vmul.f32 %v1436_v20, %v995_v21 }
 0x5cd   : > { %v1009_v24 = vadd.f32 %v1437_v22, %v1002_v23 }
 0x5cf   : > { %v1010_v25 = vpack.c.bf16 %v1009_v24, %v1009_v24 }
 0x5d1   : > { %1502 = vmatmul.mubr.msk.bf16.vlgmr.msra.gmra.mxu0 %vm723_vm4, %v1010_v25 }
 0x691   : > { %v1071_v29 = vpop.f32.mrf.mxu0 }
 0x692   : > { %v1072_v30 = vadd.f32 %v1438_v28, %v1071_v29 }
 0x693   : > { %v1503_v31 = vpop.f32.mrf.mxu0 }
 0x694   : > { %v1077_v32 = vmax.f32 %v1072_v30, 0.0 }
 0x695   : > { %v1074_v33 = vpop.f32.mrf.mxu0 }
 0x696   : > { %v1078_v34 = vpack.c.bf16 %v1077_v32, %v1077_v32 }
 0x697   : > { %v1504_v35 = vpop.f32.mrf.mxu0 }
 0x698   : > { %1514 = vmatmul.mubr.msk.bf16.vlgmr.msra.gmra.mxu1 %vm1118_vm9, %v1078_v34 }
 0x758   : > { %v1156_v37 = vpop.f32.mrf.mxu1 }
 0x759   : > { %v1157_v38 = vadd.f32 %v1442_v36, %v1156_v37 }
 0x75a   : > { %v1515_v39 = vpop.f32.mrf.mxu1 }
 0x75b   : > { %v1162_v40 = vadd.f32 %v1157_v38, %v1009_v24 }
 0x75c   : > { %v1159_v41 = vpop.f32.mrf.mxu1 }
 0x75d   : > { %v1163_v42 = vsel %vm723_vm4, %v1162_v40, 0.0 }
 0x75e   : > { %1164 = vadd.xlane.f32.xlu1 %v1163_v42  ;;  %v1516_v43 = vpop.f32.mrf.mxu1 }
 0x7e7   : > { %v1165_v44 = vpop.xlane.xlu1 %1164 }
 0x7e8   : > { %v1166_v45 = vmul.f32 0.03125, %v1165_v44 }
 0x7ea   : > { %v1167_v46 = vsub.f32 %v1162_v40, %v1166_v45 }
 0x7ec   : > { %v1168_v47 = vmul.f32 %v1167_v46, %v1167_v46 }
 0x7ee   : > { %v1169_v48 = vsel %vm723_vm4, %v1168_v47, 0.0 }
 0x7ef   : > { %1170 = vadd.xlane.f32.xlu1 %v1169_v48 }
 0x878   : > { %v1171_v49 = vpop.xlane.xlu1 %1170 }
 0x879   : > { %v1172_v50 = vmul.f32 0.03125, %v1171_v49 }
 0x87b   : > { %v1173_v51 = vadd.f32 1e-05, %v1172_v50 }
 0x87d   : > { %1617 = vrsqrt.f32 %v1173_v51 }
 0x88a   : > { %v1618_v52 = vpop.eup %1617 }
 0x88b   : > { %v1175_v53 = vmul.f32 %v1618_v52, %v1167_v46 }
 0x88d   : > { %v1176_v54 = vmul.f32 %v1436_v20, %v1175_v53 }
 0x88f   : > { %v1177_v55 = vadd.f32 %v1437_v22, %v1176_v54 }
 0x891   : > { %1178 = vst.msk [vmem:[%s1956_s9] sm:$0xff] %vm723_vm4, %v1177_v55 }
 0x892 PF: > { %s2178_s19 = sld [smem:[#allocation13_spill]]  ;;  %s1200_s14 = sshll.u32 %s1956_s9, 4  ;;  %s1201_s14 = int_to_ptr.vmem [resolvable:$true] %s1200_s14 }
 0x893   : > { %s2180_s11 = sld [smem:[#allocation31_spill]]  ;;  %s1183_s26 = scalar_lea.sflag [#allocation5], %s1906_s30 }
 0x894   : > { %s1619_s28 = scalar_lea.vmem %s1201_s14, 128  ;;  %s1749_s21 = smov [#allocation4]  }
 0x895   : > { %p1620_p2 = scmp.ne.s32.totalorder %s1201_s14, %s1619_s28  ;;  %s1623_s17 = sshll.u32 %s1749_s21, 4  ;;  %s1624_s17 = int_to_ptr.vmem [resolvable:$false] %s1623_s17 }
 0x896   : > { %s1625_s4 = scalar_lea.vmem %s1624_s17, 256  ;;  %p1626_p6 = scmp.lt.s32.totalorder %s1201_s14, %s1624_s17 }
 0x897   : > { %p1621_p4 = pnand %p1620_p2, %p1885_p3  ;;  %p1627_p7 = scmp.lt.s32.totalorder %s1625_s4, %s1619_s28 }
 0x898   : > { %s1449_s15 = sshll.u32 %s2178_s19, 7 }
 0x899   : > { %s1198_s12 = scalar_lea.hbm %s2180_s11, %s1449_s15  ;;  %p1622_p5 = pneg %p1621_p4 }
 0x89a   : > { %p1628_p8 = por %p1627_p7, %p1626_p6 }
 0x89c   : > { %p1629_p10 = pnand %p1628_p8, %p1622_p5 }
 0x89e   : > { %1632 = shalt.err (!%p1629_p10)
}
 0x89f   : > { %s1633_s0 = scalar_lea.hbm %s1198_s12, 128  ;;  %s1637_s24 = scalar_lea.hbm %s2180_s11, 256 }
 0x8a0   : > { %p1634_p11 = scmp.ne.s32.totalorder %s1198_s12, %s1633_s0  ;;  %p1638_p0 = scmp.lt.s32.totalorder %s1198_s12, %s2180_s11 }
 0x8a1   : > { %p1639_p1 = scmp.lt.s32.totalorder %s1637_s24, %s1633_s0 }
 0x8a2   : > { %p1635_p12 = pnand %p1634_p11, %p1885_p3 }
 0x8a3   : > { %p1640_p2 = por %p1639_p1, %p1638_p0 }
 0x8a4   : > { %p1636_p13 = pneg %p1635_p12 }
 0x8a6   : > { %p1641_p4 = pnand %p1640_p2, %p1636_p13 }
 0x8a8   : > { %1644 = shalt.err (!%p1641_p4)
}
 0x8a9   : > { %1517 = dma.vmem_to_hbm [thread:$0]  (%p1885_p3), %s1201_s14, 128, %s1198_s12, %s1183_s26  }
 0x8aa   : > { %s1450_s23 = sshll.u32 %s2178_s19, 4  ;;  %s1213_s16 = sshll.u32 %s1959_s13, 4  ;;  %s1214_s16 = int_to_ptr.vmem [resolvable:$true] %s1213_s16 }
 0x8ab   : > { %s2181_s10 = sld [smem:[#allocation32_spill]]  ;;  %s1188_s21 = scalar_lea.sflag [#allocation7], %s1906_s30 }
 0x8ac   : > { %s1645_s17 = scalar_lea.vmem %s1214_s16, 16  ;;  %s1750_s4 = smov [#allocation6]  }
 0x8ad   : > { %p1646_p5 = scmp.ne.s32.totalorder %s1214_s16, %s1645_s17  ;;  %s1649_s0 = sshll.u32 %s1750_s4, 4  ;;  %s1650_s0 = int_to_ptr.vmem [resolvable:$false] %s1649_s0 }
 0x8ae   : > { %s1651_s9 = scalar_lea.vmem %s1650_s0, 32  ;;  %p1652_p8 = scmp.lt.s32.totalorder %s1214_s16, %s1650_s0 }
 0x8af   : > { %p1647_p6 = pnand %p1646_p5, %p1885_p3  ;;  %p1653_p10 = scmp.lt.s32.totalorder %s1651_s9, %s1645_s17 }
 0x8b1   : > { %s1211_s28 = scalar_lea.hbm %s2181_s10, %s1450_s23  ;;  %p1648_p7 = pneg %p1647_p6 }
 0x8b2   : > { %p1654_p11 = por %p1653_p10, %p1652_p8 }
 0x8b4   : > { %p1655_p12 = pnand %p1654_p11, %p1648_p7 }
 0x8b6   : > { %1658 = shalt.err (!%p1655_p12)
}
 0x8b7   : > { %s1659_s13 = scalar_lea.hbm %s1211_s28, 16  ;;  %s1663_s12 = scalar_lea.hbm %s2181_s10, 32 }
 0x8b8   : > { %p1660_p13 = scmp.ne.s32.totalorder %s1211_s28, %s1659_s13  ;;  %p1664_p2 = scmp.lt.s32.totalorder %s1211_s28, %s2181_s10 }
 0x8b9   : > { %p1665_p4 = scmp.lt.s32.totalorder %s1663_s12, %s1659_s13 }
 0x8ba   : > { %p1661_p0 = pnand %p1660_p13, %p1885_p3 }
 0x8bb   : > { %p1666_p5 = por %p1665_p4, %p1664_p2 }
 0x8bc   : > { %p1662_p1 = pneg %p1661_p0 }
 0x8be   : > { %p1667_p6 = pnand %p1666_p5, %p1662_p1 }
 0x8c0   : > { %1670 = shalt.err (!%p1667_p6)
}
 0x8c1   : > { %1518 = dma.vmem_to_hbm [thread:$0]  (%p1885_p3), %s1214_s16, 16, %s1211_s28, %s1188_s21  }
 0x8c2 PF: > { %s2182_s20 = sld [smem:[#allocation16_spill]] }
 0x8c3   : > { %s2183_s24 = sld [smem:[#allocation10_spill]] }
 0x8c8   : > { %p1528_p7 = scmp.ge.s32.totalorder %s2182_s20, 2 }
 0x8c9   : > { %s1225_s22 = sand.u32 1, %s2183_s24  }
 0x8ca   : > { %p1522_p8 = pnand %p1528_p7, %p1895_p9  ;;  %s1226_s23 = scalar_lea.sflag [#allocation5], %s1225_s22 }
 0x8cc   : > { %p1523_p10 = pneg %p1522_p8 }
 0x8ce   : > { %1704 = dma.done.wait (%p1523_p10), %s1226_s23, 128  }
 0x8cf   : > { %1706 = vsyncadd (%p1523_p10), %s1226_s23, 4294967168  ;;  %s1235_s15 = scalar_lea.sflag [#allocation7], %s1225_s22 }
 0x8d0   : > { %1708 = dma.done.wait (%p1523_p10), %s1235_s15, 16  }
 0x8d1   : > { %1710 = vsyncadd (%p1523_p10), %s1235_s15, 4294967280  ;;  %s33_s28 = sadd.s32 1, %s2182_s20   ;;  %s2185_s21 = sld [smem:[#allocation11_spill]] }
 0x8d2   : > { %p30_p11 = scmp.ge.s32.totalorder %s33_s28, 10   ;;  %s2186_s22 = sld [smem:[#allocation12_spill]] }
 0x8d3   : > { %s2187_s23 = sld [smem:[#allocation21_spill]] }
 0x8d4   : > { %s2188_s24 = sld [smem:[#allocation14_spill]]  ;;  %32 = sbr.rel (!%p30_p11) target bundleno = 19 (0x13), region = 161 }
 0x8d5   : > { %s2189_s25 = sld [smem:[#allocation15_spill]] }
 0x8d6   : > { %s2190_s26 = sld [smem:[#allocation17_spill]] }
 0x8d7   : > { %s2191_s27 = sld [smem:[#allocation19_spill]] }
 0x8d9   :  { %1239 = vsyncpa [#allocation5], 1 }
 0x8da   :  { %1241 = vsyncpa [#allocation5 + $0x1], 1 }
 0x8db   :  { %1242 = vsyncpa [#allocation7], 1 }
 0x8dc   :  { %1244 = vsyncpa [#allocation7 + $0x1], 1 }

</bundles_post_ra>
